<compile_context>
chip_gen: v6e
topology: v6e:2x2x1
jax: 0.10.0
libtpu: 0.0.40
codegen_flags: <defaults>
</compile_context>

<pallas_src>
import jax
import jax.numpy as jnp
from jax.experimental import pallas as pl
from jax.experimental.pallas import tpu as pltpu


# ----------------------------------------------------------------------------
# Kernel
# ----------------------------------------------------------------------------
def _action_decoder_kernel(s_ref, g_ref, w1s_ref, w1g_ref, b1_ref,
                           w2_ref, b2_ref, out_ref):
    # Layer 1: concat folded into (W1_s, W1_g) -> two MXU matmuls, f32 accum.
    h = jnp.dot(s_ref[...], w1s_ref[...], preferred_element_type=jnp.float32)
    h = h + jnp.dot(g_ref[...], w1g_ref[...], preferred_element_type=jnp.float32)
    h = jnp.maximum(h + b1_ref[...], 0.0)          # bias (already f32) + ReLU

    # Layer 2: cast activations to the weight dtype (bf16 MXU pass for bf16
    # weights, no-op for f32), accumulate in f32, bias already f32.
    out = jnp.dot(h.astype(w2_ref.dtype), w2_ref[...],
                  preferred_element_type=jnp.float32)
    out_ref[...] = (out + b2_ref[...]).astype(out_ref.dtype)


# ----------------------------------------------------------------------------
# One-time parameter preparation (hoist out of the per-call path / jit once)
# ----------------------------------------------------------------------------
def fold_action_decoder_params(w1, b1, w2, b2, compute_dtype=None):
    """Fold the concat into W1 and cast params for the kernel.

    w1: (3D, H); b1: (H,) or (1, H); w2: (H, A); b2: (A,) or (1, A).
    compute_dtype: dtype for the matmul weights (use the activation dtype,
    e.g. bf16, for native low-precision MXU passes). Biases are kept f32.
    """
    D3, H = w1.shape
    assert D3 % 3 == 0, "first Linear must take the 3*D concat input"
    D = D3 // 3
    A = w2.shape[1]
    if compute_dtype is None:
        compute_dtype = w1.dtype

    # concat([s, g, g-s]) @ W1 == s @ (W1[:D]-W1[2D:]) + g @ (W1[D:2D]+W1[2D:])
    w1_s = (w1[:D] - w1[2 * D:3 * D]).astype(compute_dtype)       # (D, H)
    w1_g = (w1[D:2 * D] + w1[2 * D:3 * D]).astype(compute_dtype)  # (D, H)
    b1_f = b1.reshape(1, H).astype(jnp.float32)
    w2_c = w2.astype(compute_dtype)                                # (H, A)
    b2_f = b2.reshape(1, A).astype(jnp.float32)
    return (w1_s, w1_g, b1_f, w2_c, b2_f)


# ----------------------------------------------------------------------------
# Forward
# ----------------------------------------------------------------------------
def _round_up(x, m):
    return -(-x // m) * m


def _round_down(x, m):
    return (x // m) * m


def action_decoder_forward(state, subgoal_state, folded_params, *,
                           block_b=4096, vmem_budget_bytes=20 * 1024 * 1024):
    """state, subgoal_state: (B, D); folded_params from fold_action_decoder_params."""
    w1_s, w1_g, b1_f, w2_c, b2_f = folded_params
    B, D = state.shape
    assert subgoal_state.shape == (B, D)
    H = w1_s.shape[1]
    A = w2_c.shape[1]
    assert w1_s.shape == (D, H) and w1_g.shape == (D, H)
    out_dtype = state.dtype

    act_bytes = jnp.dtype(state.dtype).itemsize
    out_bytes = jnp.dtype(out_dtype).itemsize
    w_bytes = jnp.dtype(w1_s.dtype).itemsize

    # ---- batch tiling --------------------------------------------------------
    row_mult = 16 if state.dtype == jnp.bfloat16 else 8
    block_b = max(row_mult, _round_down(int(block_b), row_mult))

    # VMEM per batch row (lane dims pad to 128 in VMEM): two double-buffered
    # input streams + double-buffered output tile + f32 hidden/temp headroom.
    D_l, H_l, A_l = _round_up(D, 128), _round_up(H, 128), _round_up(A, 128)
    per_row = (2 * 2 * D_l * act_bytes   # state + subgoal tiles, 2 buffers each
               + 2 * A_l * out_bytes     # output tile, 2 buffers
               + 2 * H_l * 4)            # hidden activation / temporaries (f32)
    tb_budget = max(row_mult, _round_down(vmem_budget_bytes // per_row, row_mult))

    # Keep >= 2 grid steps when the batch allows it, so the "parallel" batch
    # axis can be sharded across both TensorCores on v7x.
    if B >= 2 * row_mult:
        tb_cap = max(row_mult, _round_up(pl.cdiv(B, 2), row_mult))
    else:
        tb_cap = B   # single tile; block == full array dim is always legal

    tb = min(block_b, tb_budget, tb_cap)
    nb = pl.cdiv(B, tb)   # boundary tile may be partial; rows are independent

    cost = pl.CostEstimate(
        flops=2 * B * (2 * D * H + H * A),
        transcendentals=0,
        bytes_accessed=(2 * B * D * act_bytes
                        + (2 * D * H + H * A) * w_bytes
                        + (H + A) * 4
                        + B * A * out_bytes),
    )

    const = lambda shape: pl.BlockSpec(shape, lambda i: (0, 0))

    out = pl.pallas_call(
        _action_decoder_kernel,
        out_shape=jax.ShapeDtypeStruct((B, A), out_dtype),
        grid=(nb,),
        in_specs=[
            pl.BlockSpec((tb, D), lambda i: (i, 0)),   # state tile (pipelined)
            pl.BlockSpec((tb, D), lambda i: (i, 0)),   # subgoal tile (pipelined)
            const((D, H)),                             # W1_s  (VMEM-resident)
            const((D, H)),                             # W1_g  (VMEM-resident)
            const((1, H)),                             # b1 (f32)
            const((H, A)),                             # W2 (unpadded)
            const((1, A)),                             # b2 (f32)
        ],
        out_specs=pl.BlockSpec((tb, A), lambda i: (i, 0)),   # no 128-lane pad
        compiler_params=pltpu.CompilerParams(
            dimension_semantics=("parallel",),          # megacore-shard batch
            vmem_limit_bytes=32 * 1024 * 1024),         # v5e default is only 16 MiB
        cost_estimate=cost,
    )(state, subgoal_state, w1_s, w1_g, b1_f, w2_c, b2_f)

    return out


def reference_forward(state, subgoal_state, w1, b1, w2, b2):
    """Pure-JAX reference mirroring the PyTorch forward exactly."""
    x = jnp.concatenate([state, subgoal_state, subgoal_state - state], axis=-1)
    h = jnp.maximum(x @ w1 + b1, 0.0)
    return h @ w2 + b2


if __name__ == "__main__":
    # Small shapes consistent with the module:
    #   dim_in = 32 (per-state feature size) -> decoder input = 3 * 32 = 96
    #   hidden = 64, action_dim = 8 (e.g. Discrete(8) -> 8 logits)
    B, D, H, A = 8, 32, 64, 8

    key = jax.random.PRNGKey(0)
    ks = jax.random.split(key, 6)

    state = jax.random.normal(ks[0], (B, D), dtype=jnp.float32)
    subgoal_state = jax.random.normal(ks[1], (B, D), dtype=jnp.float32)

    # Deterministic synthetic parameters (no checkpoint load).
    w1 = jax.random.normal(ks[2], (3 * D, H), dtype=jnp.float32) * 0.05
    b1 = jax.random.normal(ks[3], (1, H), dtype=jnp.float32) * 0.01
    w2 = jax.random.normal(ks[4], (H, A), dtype=jnp.float32) * 0.05
    b2 = jax.random.normal(ks[5], (1, A), dtype=jnp.float32) * 0.01

    # Fold once (per parameter update), jit the forward with folded params
    # closed over so the fold never runs on the per-call path.
    folded = fold_action_decoder_params(w1, b1, w2, b2,
                                        compute_dtype=state.dtype)
    fwd = jax.jit(lambda s, g: action_decoder_forward(s, g, folded))

    out = jax.block_until_ready(fwd(state, subgoal_state))

    ref = reference_forward(state, subgoal_state, w1, b1, w2, b2)
    assert out.shape == (B, A)
    assert jnp.allclose(out, ref, atol=1e-4, rtol=1e-4), "mismatch vs reference"

    # TODO(synk): the real `Decoder` class is not provided; a Linear->ReLU->Linear
    # action head is assumed. Swap in the exact mlp_config layer stack if known.
    print("KERNEL_OK")
</pallas_src>

<mosaic_0001>
module attributes {stable_mosaic.version = 11 : i64} {
  func.func @_action_decoder_kernel(%arg0: i32, %arg1: memref<8x32xf32, #tpu.memory_space<vmem>>, %arg2: memref<8x32xf32, #tpu.memory_space<vmem>>, %arg3: memref<32x64xf32, #tpu.memory_space<vmem>>, %arg4: memref<32x64xf32, #tpu.memory_space<vmem>>, %arg5: memref<1x64xf32, #tpu.memory_space<vmem>>, %arg6: memref<64x8xf32, #tpu.memory_space<vmem>>, %arg7: memref<1x8xf32, #tpu.memory_space<vmem>>, %arg8: memref<8x8xf32, #tpu.memory_space<vmem>>) attributes {dimension_semantics = [#tpu.dimension_semantics<parallel>], iteration_bounds = array<i64: 1>, scalar_prefetch = 0 : i64, scratch_operands = 0 : i64, tpu.core_type = #tpu.core_type<tc>, window_params = [{transform_indices = @transform_0, window_bounds = array<i64: 8, 32>}, {transform_indices = @transform_1, window_bounds = array<i64: 8, 32>}, {pipeline_mode = #tpu.pipeline_mode<synchronous>, transform_indices = @transform_2, window_bounds = array<i64: 32, 64>}, {pipeline_mode = #tpu.pipeline_mode<synchronous>, transform_indices = @transform_3, window_bounds = array<i64: 32, 64>}, {pipeline_mode = #tpu.pipeline_mode<synchronous>, transform_indices = @transform_4, window_bounds = array<i64: 1, 64>}, {pipeline_mode = #tpu.pipeline_mode<synchronous>, transform_indices = @transform_5, window_bounds = array<i64: 64, 8>}, {pipeline_mode = #tpu.pipeline_mode<synchronous>, transform_indices = @transform_6, window_bounds = array<i64: 1, 8>}, {transform_indices = @transform_7, window_bounds = array<i64: 8, 8>}]} {
    %c0 = arith.constant 0 : index
    %c0_0 = arith.constant 0 : index
    %0 = vector.load %arg1[%c0, %c0_0] : memref<8x32xf32, #tpu.memory_space<vmem>>, vector<8x32xf32>
    %c0_1 = arith.constant 0 : index
    %c0_2 = arith.constant 0 : index
    %1 = vector.load %arg3[%c0_1, %c0_2] : memref<32x64xf32, #tpu.memory_space<vmem>>, vector<32x64xf32>
    %cst = arith.constant dense<0.000000e+00> : vector<8x64xf32>
    %2 = tpu.matmul %0, %1, %cst {dimension_numbers = #tpu.dot_dimension_numbers<[1], [0], [0], [1], [0, 0, 1, 1], [], []>} : vector<8x32xf32>, vector<32x64xf32>, vector<8x64xf32> -> vector<8x64xf32>
    %c0_3 = arith.constant 0 : index
    %c0_4 = arith.constant 0 : index
    %3 = vector.load %arg2[%c0_3, %c0_4] : memref<8x32xf32, #tpu.memory_space<vmem>>, vector<8x32xf32>
    %c0_5 = arith.constant 0 : index
    %c0_6 = arith.constant 0 : index
    %4 = vector.load %arg4[%c0_5, %c0_6] : memref<32x64xf32, #tpu.memory_space<vmem>>, vector<32x64xf32>
    %cst_7 = arith.constant dense<0.000000e+00> : vector<8x64xf32>
    %5 = tpu.matmul %3, %4, %cst_7 {dimension_numbers = #tpu.dot_dimension_numbers<[1], [0], [0], [1], [0, 0, 1, 1], [], []>} : vector<8x32xf32>, vector<32x64xf32>, vector<8x64xf32> -> vector<8x64xf32>
    %6 = arith.addf %2, %5 : vector<8x64xf32>
    %c0_8 = arith.constant 0 : index
    %c0_9 = arith.constant 0 : index
    %7 = vector.load %arg5[%c0_8, %c0_9] : memref<1x64xf32, #tpu.memory_space<vmem>>, vector<1x64xf32>
    %8 = vector.broadcast %7 : vector<1x64xf32> to vector<8x64xf32>
    %9 = arith.addf %6, %8 : vector<8x64xf32>
    %cst_10 = arith.constant 0.000000e+00 : f32
    %10 = vector.broadcast %cst_10 : f32 to vector<8x64xf32>
    %11 = arith.maximumf %9, %10 : vector<8x64xf32>
    %c0_11 = arith.constant 0 : index
    %c0_12 = arith.constant 0 : index
    %12 = vector.load %arg6[%c0_11, %c0_12] : memref<64x8xf32, #tpu.memory_space<vmem>>, vector<64x8xf32>
    %cst_13 = arith.constant dense<0.000000e+00> : vector<8x8xf32>
    %13 = tpu.matmul %11, %12, %cst_13 {dimension_numbers = #tpu.dot_dimension_numbers<[1], [0], [0], [1], [0, 0, 1, 1], [], []>} : vector<8x64xf32>, vector<64x8xf32>, vector<8x8xf32> -> vector<8x8xf32>
    %c0_14 = arith.constant 0 : index
    %c0_15 = arith.constant 0 : index
    %14 = vector.load %arg7[%c0_14, %c0_15] : memref<1x8xf32, #tpu.memory_space<vmem>>, vector<1x8xf32>
    %15 = vector.broadcast %14 : vector<1x8xf32> to vector<8x8xf32>
    %16 = arith.addf %13, %15 : vector<8x8xf32>
    %c0_16 = arith.constant 0 : index
    %c0_17 = arith.constant 0 : index
    %17 = vector.load %arg8[%c0_16, %c0_17] : memref<8x8xf32, #tpu.memory_space<vmem>>, vector<8x8xf32>
    tpu.vector_store %arg8[%c0_16, %c0_17], %16 {strides = array<i32>} : memref<8x8xf32, #tpu.memory_space<vmem>>, vector<8x8xf32>,
    return
  }
  func.func @transform_0(%arg0: i32) -> (i32, i32) {
    %c0_i32 = arith.constant 0 : i32
    %c0_i32_0 = arith.constant 0 : i32
    return %arg0, %c0_i32 : i32, i32
  }
  func.func @transform_1(%arg0: i32) -> (i32, i32) {
    %c0_i32 = arith.constant 0 : i32
    %c0_i32_0 = arith.constant 0 : i32
    return %arg0, %c0_i32 : i32, i32
  }
  func.func @transform_2(%arg0: i32) -> (i32, i32) {
    %c0_i32 = arith.constant 0 : i32
    %c0_i32_0 = arith.constant 0 : i32
    %c0_i32_1 = arith.constant 0 : i32
    return %c0_i32, %c0_i32_0 : i32, i32
  }
  func.func @transform_3(%arg0: i32) -> (i32, i32) {
    %c0_i32 = arith.constant 0 : i32
    %c0_i32_0 = arith.constant 0 : i32
    %c0_i32_1 = arith.constant 0 : i32
    return %c0_i32, %c0_i32_0 : i32, i32
  }
  func.func @transform_4(%arg0: i32) -> (i32, i32) {
    %c0_i32 = arith.constant 0 : i32
    %c0_i32_0 = arith.constant 0 : i32
    %c0_i32_1 = arith.constant 0 : i32
    return %c0_i32, %c0_i32_0 : i32, i32
  }
  func.func @transform_5(%arg0: i32) -> (i32, i32) {
    %c0_i32 = arith.constant 0 : i32
    %c0_i32_0 = arith.constant 0 : i32
    %c0_i32_1 = arith.constant 0 : i32
    return %c0_i32, %c0_i32_0 : i32, i32
  }
  func.func @transform_6(%arg0: i32) -> (i32, i32) {
    %c0_i32 = arith.constant 0 : i32
    %c0_i32_0 = arith.constant 0 : i32
    %c0_i32_1 = arith.constant 0 : i32
    return %c0_i32, %c0_i32_0 : i32, i32
  }
  func.func @transform_7(%arg0: i32) -> (i32, i32) {
    %c0_i32 = arith.constant 0 : i32
    %c0_i32_0 = arith.constant 0 : i32
    return %arg0, %c0_i32 : i32, i32
  }
}

</mosaic_0001>

<bundles_post_ra>
// kernel: _lambda_.1
= control target key start
LH: loop header
LB: loop body
LE: loop exit
PB: predicated region body
PF: predicated region fallthrough
CT: control target
= control target key end

     0   :  { %12 = vsyncpa [#allocation3], 0  ;;  %s656_s0 = inlined_call_operand.hbm [shape: f32[8,32], index: 0, kind: input, shape index: {}]   ;;  %s657_s1 = inlined_call_operand.hbm [shape: f32[8,32], index: 1, kind: input, shape index: {}]   ;;  %s658_s2 = inlined_call_operand.hbm [shape: f32[32,64], index: 2, kind: input, shape index: {}]   ;;  %s659_s3 = inlined_call_operand.hbm [shape: f32[32,64], index: 3, kind: input, shape index: {}]   ;;  %s660_s4 = inlined_call_operand.vmem [shape: f32[1,64], index: 4, kind: input, shape index: {}]   ;;  %s661_s5 = inlined_call_operand.hbm [shape: f32[64,8], index: 5, kind: input, shape index: {}]   ;;  %s662_s6 = inlined_call_operand.vmem [shape: f32[1,8], index: 6, kind: input, shape index: {}]   ;;  %s663_s7 = inlined_call_operand.hbm [shape: f32[8,8], index: 7, kind: output, shape index: {}]  }
   0x1   :  { %13 = vsyncpa [#allocation6], 0 }
   0x2   :  { %14 = vsyncpa [#allocation9], 0 }
   0x3   :  { %15 = vsyncpa [#allocation4], 0  ;;  %s568_s24 = smov [#allocation5]  }
   0x4   :  { %s32_s25 = sshll.u32 %s568_s24, 4  ;;  %s33_s25 = int_to_ptr.vmem [resolvable:$true] %s32_s25 }
   0x5   :  { %s448_s26 = scalar_lea.vmem %s33_s25, 128  ;;  %p453_p1 = scmp.lt.s32.totalorder %s33_s25, %s33_s25 }
   0x6   :  { %p449_p0 = scmp.ne.s32.totalorder %s33_s25, %s448_s26  ;;  %p454_p2 = scmp.lt.s32.totalorder %s448_s26, %s448_s26 }
   0x8   :  { %p455_p3 = por %p454_p2, %p453_p1 }
   0xa   :  { %p456_p4 = pnand %p455_p3, %p449_p0 }
   0xc   :  { %459 = shalt.err (!%p456_p4)
}
   0xd   :  { %35 = dma.hbm_to_vmem [thread:$0]  %s657_s1, 128, %s33_s25, [#allocation6]  }
   0xe   :  { %s569_s29 = smov [#allocation8]   ;;  %s570_s8 = smov [#allocation2]  }
   0xf   :  { %s53_s30 = sshll.u32 %s569_s29, 4  ;;  %s22_s9 = sshll.u32 %s570_s8, 4  ;;  %s54_s30 = int_to_ptr.vmem [resolvable:$true] %s53_s30  ;;  %s23_s9 = int_to_ptr.vmem [resolvable:$true] %s22_s9 }
  0x10   :  { %s468_s10 = scalar_lea.vmem %s54_s30, 512  ;;  %p473_p6 = scmp.lt.s32.totalorder %s54_s30, %s54_s30 }
  0x11   :  { %p469_p5 = scmp.ne.s32.totalorder %s54_s30, %s468_s10  ;;  %p474_p7 = scmp.lt.s32.totalorder %s468_s10, %s468_s10 }
  0x13   :  { %p475_p8 = por %p474_p7, %p473_p6 }
  0x15   :  { %p476_p9 = pnand %p475_p8, %p469_p5 }
  0x17   :  { %479 = shalt.err (!%p476_p9)
}
  0x18   :  { %s571_s11 = smov 128   ;;  %s572_s12 = smov 8  }
  0x19   :  { %59 = dma.hbm_to_vmem [thread:$0]  %s659_s3, 512, %s54_s30, [#allocation9], %s571_s11, %s571_s11, %s572_s12  }
  0x1a   :  { %s488_s1 = scalar_lea.vmem %s23_s9, 128  ;;  %p493_p11 = scmp.lt.s32.totalorder %s23_s9, %s23_s9 }
  0x1b   :  { %p489_p10 = scmp.ne.s32.totalorder %s23_s9, %s488_s1  ;;  %p494_p12 = scmp.lt.s32.totalorder %s488_s1, %s488_s1 }
  0x1d   :  { %p495_p13 = por %p494_p12, %p493_p11 }
  0x1f   :  { %p496_p0 = pnand %p495_p13, %p489_p10 }
  0x21   :  { %499 = shalt.err (!%p496_p0)
}
  0x22   :  { %25 = dma.hbm_to_vmem [thread:$0]  %s656_s0, 128, %s23_s9, [#allocation3]  }
  0x23   :  { %s573_s17 = smov [#allocation7]   ;;  %s574_s19 = smov [#allocation10]  }
  0x24   :  { %s41_s18 = sshll.u32 %s573_s17, 4  ;;  %s67_s20 = sshll.u32 %s574_s19, 4  ;;  %s42_s18 = int_to_ptr.vmem [resolvable:$true] %s41_s18  ;;  %s68_s20 = int_to_ptr.vmem [resolvable:$true] %s67_s20 }
  0x25   :  { %s508_s21 = scalar_lea.vmem %s42_s18, 512  ;;  %p513_p2 = scmp.lt.s32.totalorder %s42_s18, %s42_s18 }
  0x26   :  { %p509_p1 = scmp.ne.s32.totalorder %s42_s18, %s508_s21  ;;  %p514_p3 = scmp.lt.s32.totalorder %s508_s21, %s508_s21 }
  0x28   :  { %p515_p4 = por %p514_p3, %p513_p2 }
  0x2a   :  { %p516_p5 = pnand %p515_p4, %p509_p1 }
  0x2c   :  { %519 = shalt.err (!%p516_p5)
}
  0x2d   :  { %47 = dma.hbm_to_vmem [thread:$0]  %s658_s2, 512, %s42_s18, [#allocation6], %s571_s11, %s571_s11, %s572_s12  }
  0x2e   :  { %s528_s0 = scalar_lea.vmem %s68_s20, 1024  ;;  %p533_p7 = scmp.lt.s32.totalorder %s68_s20, %s68_s20 }
  0x2f   :  { %p529_p6 = scmp.ne.s32.totalorder %s68_s20, %s528_s0  ;;  %p534_p8 = scmp.lt.s32.totalorder %s528_s0, %s528_s0 }
  0x31   :  { %p535_p9 = por %p534_p8, %p533_p7 }
  0x33   :  { %p536_p10 = pnand %p535_p9, %p529_p6 }
  0x35   :  { %539 = shalt.err (!%p536_p10)
}
  0x36   :  { %73 = dma.hbm_to_vmem [thread:$0]  %s661_s5, 1024, %s68_s20, [#allocation9], %s571_s11, %s571_s11, %s572_s12  }
  0x37   :  { %560 = dma.done.wait [#allocation3], 128  }
  0x38   :  { %561 = vsyncadd [#allocation3], 4294967168 }
  0x39   :  { %562 = dma.done.wait [#allocation6], 640  }
  0x3a   :  { %563 = vsyncadd [#allocation6], 4294966656 }
  0x3b   :  { %564 = dma.done.wait [#allocation9], 1536  }
  0x3c   :  { %565 = vsyncadd [#allocation9], 4294965760  ;;  %v575_v0 = vmov 0.0   ;;  %vm576_vm0 = vmmov 0   ;;  %v100_v1 = vld [vmem:[#allocation8 + $0x18] sm:$0xff]  ;;  %v99_v2 = vld [vmem:[#allocation8 + $0x10] sm:$0xff] }
  0x3d   :  { %389 = vmatprep.subr.mxu1 %v575_v0  ;;  %397 = vmatprep.mubr.msk.f32.mxu1 %vm576_vm0, %v575_v0  ;;  %v98_v3 = vld [vmem:[#allocation8 + $0x8] sm:$0xff]  ;;  %v97_v4 = vld [vmem:[#allocation8] sm:$0xff]  ;;  %v96_v5 = vld [vmem:[#allocation5] sm:$0xff]  ;;  %vm101_vm1 = vcmask 261120   ;;  %vm272_vm2 = vcmask 523264   ;;  %s577_s27 = smov [#allocation11]  }
  0x3e   :  { %411 = vmatprep.subr.mxu0 %v575_v0  ;;  %427 = vmatprep.mubr.msk.f32.mxu0 %vm576_vm0, %v575_v0  ;;  %v95_v6 = vld [vmem:[#allocation7 + $0x18] sm:$0xff]  ;;  %v94_v7 = vld [vmem:[#allocation7 + $0x10] sm:$0xff]  ;;  %v93_v8 = vld [vmem:[#allocation7 + $0x8] sm:$0xff]  ;;  %s354_s28 = sshll.u32 %s577_s27, 4  ;;  %vm346_vm3 = vcmask 64512   ;;  %s355_s28 = int_to_ptr.vmem [resolvable:$true] %s354_s28 }
  0x3f   :  { %390 = vmatpush3.msra.mxu1 %v100_v1  ;;  %v92_v9 = vld [vmem:[#allocation7] sm:$0xff]  ;;  %v91_v10 = vld [vmem:[#allocation2] sm:$0xff]  ;;  %v264_v11 = vld [vmem:[#allocation10 + $0x38] sm:$0xff]  ;;  %s540_s29 = scalar_lea.vmem %s355_s28, 128  ;;  %p545_p12 = scmp.lt.s32.totalorder %s355_s28, %s355_s28 }
  0x40   :  { %391 = vmatprep.subr.mxu1 %v575_v0  ;;  %412 = vmatpush3.msra.mxu0 %v264_v11  ;;  %v263_v12 = vld [vmem:[#allocation10 + $0x30] sm:$0xff]  ;;  %v262_v13 = vld [vmem:[#allocation10 + $0x28] sm:$0xff]  ;;  %v261_v14 = vld [vmem:[#allocation10 + $0x20] sm:$0xff]  ;;  %p541_p11 = scmp.ne.s32.totalorder %s355_s28, %s540_s29  ;;  %p546_p13 = scmp.lt.s32.totalorder %s540_s29, %s540_s29 }
  0x41   :  { %392 = vmatpush3.msra.mxu1 %v99_v2  ;;  %413 = vmatprep.subr.mxu0 %v575_v0  ;;  %v260_v15 = vld [vmem:[#allocation10 + $0x18] sm:$0xff]  ;;  %v259_v16 = vld [vmem:[#allocation10 + $0x10] sm:$0xff]  ;;  %v258_v17 = vld [vmem:[#allocation10 + $0x8] sm:$0xff] }
  0x42   :  { %393 = vmatprep.subr.mxu1 %v575_v0  ;;  %414 = vmatpush3.msra.mxu0 %v263_v12  ;;  %v257_v18 = vld [vmem:[#allocation10] sm:$0xff]  ;;  %v367_v22 = vld [vmem:[%s660_s4] ss:$0 sm:$0xff]  ;;  %p547_p0 = por %p546_p13, %p545_p12 }
  0x43   :  { %394 = vmatpush3.msra.mxu1 %v98_v3  ;;  %415 = vmatprep.subr.mxu0 %v575_v0  ;;  %v368_v27 = vld [vmem:[%s662_s6] ss:$0 sm:$0xff] }
  0x44   :  { %395 = vmatprep.subr.mxu1 %v575_v0  ;;  %416 = vmatpush3.msra.mxu0 %v262_v13  ;;  %p548_p1 = pnand %p547_p0, %p541_p11 }
  0x45   :  { %396 = vmatpush3.msra.mxu1 %v97_v4  ;;  %417 = vmatprep.subr.mxu0 %v575_v0 }
  0x46   :  { %398 = vmatmul.mubr.msk.f32.vlgmr.msra.gmra.mxu1 %vm101_vm1, %v96_v5  ;;  %400 = vmatprep.subr.mxu1 %v575_v0 }
  0x47   :  { %401 = vmatpush3.msra.mxu1 %v95_v6  ;;  %408 = vmatprep.mubr.msk.f32.mxu1 %vm576_vm0, %v575_v0 }
  0x48   :  { %402 = vmatprep.subr.mxu1 %v575_v0  ;;  %418 = vmatpush3.msra.mxu0 %v261_v14 }
  0x49   :  { %403 = vmatpush3.msra.mxu1 %v94_v7  ;;  %419 = vmatprep.subr.mxu0 %v575_v0 }
  0x4a   :  { %404 = vmatprep.subr.mxu1 %v575_v0  ;;  %420 = vmatpush3.msra.mxu0 %v260_v15 }
  0x4b   :  { %405 = vmatpush3.msra.mxu1 %v93_v8  ;;  %421 = vmatprep.subr.mxu0 %v575_v0 }
  0x4c   :  { %406 = vmatprep.subr.mxu1 %v575_v0  ;;  %422 = vmatpush3.msra.mxu0 %v259_v16 }
  0x4d   :  { %407 = vmatpush3.msra.mxu1 %v92_v9  ;;  %423 = vmatprep.subr.mxu0 %v575_v0 }
  0x4e   :  { %409 = vmatmul.mubr.msk.f32.vlgmr.msra.gmra.mxu1 %vm101_vm1, %v91_v10  ;;  %424 = vmatpush3.msra.mxu0 %v258_v17 }
  0x4f   :  { %425 = vmatprep.subr.mxu0 %v575_v0 }
  0x50   :  { %426 = vmatpush3.msra.mxu0 %v257_v18 }
 0x106   :  { %v171_v19 = vpop.f32.mrf.mxu1 }
 0x108   :  { %v399_v20 = vpop.f32.mrf.mxu1 }
 0x10e   :  { %v244_v21 = vpop.f32.mrf.mxu1 }
 0x10f   :  { %v245_v23 = vadd.f32 %v244_v21, %v171_v19 }
 0x110   :  { %v410_v24 = vpop.f32.mrf.mxu1 }
 0x111   :  { %v255_v25 = vadd.f32 %v367_v22, %v245_v23 }
 0x113   :  { %v256_v26 = vmax.f32 %v255_v25, 0.0 }
 0x115   :  { %428 = vmatmul.mubr.msk.f32.vlgmr.msra.gmra.mxu0 %vm272_vm2, %v256_v26 }
 0x1d5   :  { %v342_v28 = vpop.f32.mrf.mxu0 }
 0x1d6   :  { %v343_v29 = vadd.f32 %v368_v27, %v342_v28 }
 0x1d7   :  { %v429_v30 = vpop.f32.mrf.mxu0 }
 0x1d8   :  { %347 = vst.msk [vmem:[#allocation11] sm:$0xff] %vm346_vm3, %v343_v29 }
 0x1d9   :  { %551 = shalt.err (!%p548_p1)
}
 0x1da   :  { %357 = dma.vmem_to_hbm [thread:$0]  %s355_s28, 128, %s663_s7, [#allocation4]  }
 0x1db   :  { %566 = dma.done.wait [#allocation4], 128  }
 0x1dc   :  { %567 = vsyncadd [#allocation4], 4294967168 }
 0x1dd   :  { %361 = vsyncpa [#allocation3], 1 }
 0x1de   :  { %362 = vsyncpa [#allocation6], 1 }
 0x1df   :  { %363 = vsyncpa [#allocation9], 1 }
 0x1e0   :  { %364 = vsyncpa [#allocation4], 1 }

</bundles_post_ra>
